<compile_context>
chip_gen: v5e
topology: v5e:2x2
jax: 0.10.0
libtpu: 0.0.40
codegen_flags: <defaults>
</compile_context>

<pallas_src>
import jax
import jax.numpy as jnp
from jax.experimental import pallas as pl
from jax.experimental.pallas import tpu as pltpu


def _conv_bn_relu_kernel(x_ref, w_ref, shift_ref, o_ref):
    # x_ref:     (Cin, TP)    pixels in lanes, channels in sublanes (native dtype)
    # w_ref:     (Cout, Cin)  BN-scale-folded 1x1 conv weight (f32, resident)
    # shift_ref: (Cout, 1)    folded conv-bias + BN shift (f32, resident)
    # o_ref:     (Cout, TP)
    acc = jnp.dot(w_ref[...], x_ref[...], preferred_element_type=jnp.float32)
    y = acc + shift_ref[...]                          # broadcast over lanes
    o_ref[...] = jnp.maximum(y, 0.0).astype(o_ref.dtype)


def _round_down(v, m):
    return (v // m) * m


def _round_up(v, m):
    return ((v + m - 1) // m) * m


def _vmem_budget_bytes():
    """Generation-aware scoped-VMEM budget: ~3/4 of physical, capped at 96 MiB."""
    phys = 64 * 1024 * 1024            # conservative fallback (v7x per-TC VMEM)
    try:
        cap = getattr(pltpu.get_tpu_info(), "vmem_capacity_bytes", None)
        if cap:
            phys = int(cap)
    except Exception:
        pass
    return min((phys * 3) // 4, 96 * 1024 * 1024)


def _pick_pixel_tile(P, N, x_bytes, out_bytes, Cin, Cout, vmem_budget, pixel_tile=None):
    """Largest useful 128-aligned pixel tile within the VMEM budget (ragged tail ok)."""
    if pixel_tile is not None:
        return P if pixel_tile >= P else max(128, _round_down(pixel_tile, 128))
    # Double-buffered per-pixel VMEM footprint (input tile + output tile).
    per_pixel = 2 * (Cin * x_bytes + Cout * out_bytes)
    tp = int(vmem_budget * 0.7) // per_pixel            # headroom for weights/scratch
    tp = min(tp, 256 * 1024)                            # multi-MiB payload is enough
    tp = max(128, _round_down(tp, 128))
    if N == 1 and P > 256:
        # Guarantee >= 2 parallel grid steps so both v7x TensorCores are fed.
        tp = min(tp, _round_up(-(-P // 2), 128))
    if tp >= P:
        return P                                        # block == full dim: always legal
    return tp                                           # 128-aligned; cdiv grid masks tail


def conv_bn_relu(x_nchw, weight, bias, gamma, beta, running_mean, running_var,
                 eps=1e-5, out_dtype=None, pixel_tile=None):
    """Fused 1x1 Conv(stride=1, pad=0) + BatchNorm2d(eval) + ReLU.

    x_nchw: (N, Cin, H, W); weight: (Cout, Cin, 1, 1); others: (Cout,).
    Returns (N, Cout, H, W) in `out_dtype` (default: x_nchw.dtype).
    """
    N, Cin, H, W = x_nchw.shape
    Cout = weight.shape[0]
    P = H * W
    out_dtype = x_nchw.dtype if out_dtype is None else out_dtype

    # NCHW -> (N, Cin, H*W): pure reshape, no transpose, NO dtype cast (one HBM pass).
    x3d = x_nchw.reshape(N, Cin, P)

    # Fold BN (inference) + conv bias:  y = (w * scale) @ x + shift
    f32 = jnp.float32
    inv_std = 1.0 / jnp.sqrt(running_var.astype(f32) + eps)
    scale = gamma.astype(f32) * inv_std                                   # (Cout,)
    w_scaled = weight.reshape(Cout, Cin).astype(f32) * scale[:, None]     # (Cout, Cin) f32
    shift = ((bias.astype(f32) - running_mean.astype(f32)) * scale
             + beta.astype(f32)).reshape(Cout, 1)                         # (Cout, 1) f32

    x_bytes = jnp.dtype(x_nchw.dtype).itemsize
    out_bytes = jnp.dtype(out_dtype).itemsize
    vmem_budget = _vmem_budget_bytes()
    TP = _pick_pixel_tile(P, N, x_bytes, out_bytes, Cin, Cout, vmem_budget, pixel_tile)
    grid = (N, pl.cdiv(P, TP))

    cost = pl.CostEstimate(
        flops=2 * N * P * Cin * Cout,
        transcendentals=0,
        bytes_accessed=N * P * (Cin * x_bytes + Cout * out_bytes)
        + Cout * Cin * 4 + Cout * 4,
    )

    out3d = pl.pallas_call(
        _conv_bn_relu_kernel,
        out_shape=jax.ShapeDtypeStruct((N, Cout, P), out_dtype),
        grid_spec=pltpu.PrefetchScalarGridSpec(
            num_scalar_prefetch=0,
            grid=grid,
            in_specs=[
                pl.BlockSpec((None, Cin, TP), lambda n, p: (n, 0, p)),   # x tile
                pl.BlockSpec((Cout, Cin), lambda n, p: (0, 0)),          # weight (resident)
                pl.BlockSpec((Cout, 1), lambda n, p: (0, 0)),            # shift (resident)
            ],
            out_specs=pl.BlockSpec((None, Cout, TP), lambda n, p: (n, 0, p)),
        ),
        compiler_params=pltpu.CompilerParams(
            dimension_semantics=("parallel", "parallel"),
            vmem_limit_bytes=int(vmem_budget),
        ),
        cost_estimate=cost,
    )(x3d, w_scaled, shift)

    # (N, Cout, H*W) -> (N, Cout, H, W): pure reshape, no transpose.
    return out3d.reshape(N, Cout, H, W)


if __name__ == "__main__":
    # Module config: Conv_BN_Relu(in_dim=4, out_dim=8) -> k=1, s=1, p=0, bn, relu
    N, Cin, H, W = 2, 4, 16, 16
    Cout = 8

    key = jax.random.PRNGKey(0)
    kx, kw, kb, kg, kbeta, km, kv, kx2 = jax.random.split(key, 8)

    x = jax.random.normal(kx, (N, Cin, H, W), dtype=jnp.float32)

    # Deterministic parameter init (synthetic; PyTorch-like magnitudes).
    fan_in = Cin * 1 * 1
    bound = 1.0 / (fan_in ** 0.5)
    weight = jax.random.uniform(kw, (Cout, Cin, 1, 1), minval=-bound, maxval=bound,
                                dtype=jnp.float32)
    bias = jax.random.uniform(kb, (Cout,), minval=-bound, maxval=bound, dtype=jnp.float32)
    gamma = 1.0 + 0.1 * jax.random.normal(kg, (Cout,), dtype=jnp.float32)
    beta = 0.1 * jax.random.normal(kbeta, (Cout,), dtype=jnp.float32)
    running_mean = 0.1 * jax.random.normal(km, (Cout,), dtype=jnp.float32)
    running_var = jnp.abs(1.0 + 0.1 * jax.random.normal(kv, (Cout,), dtype=jnp.float32))

    # Pure-JAX reference (1x1 conv == per-pixel matmul), BN in eval mode.
    def reference(xx):
        r = (jnp.einsum("nchw,oc->nohw", xx, weight.reshape(Cout, Cin))
             + bias[None, :, None, None])
        r = (r - running_mean[None, :, None, None]) \
            / jnp.sqrt(running_var + 1e-5)[None, :, None, None]
        r = r * gamma[None, :, None, None] + beta[None, :, None, None]
        return jnp.maximum(r, 0.0)

    ref = reference(x)

    # Default path: f32 read (no pre-cast), f32 output -> strict check of the math.
    out = conv_bn_relu(x, weight, bias, gamma, beta, running_mean, running_var)
    jax.block_until_ready(out)
    assert out.shape == (N, Cout, H, W)
    assert jnp.allclose(out, ref, atol=1e-5, rtol=1e-5)

    # bf16-output path (halves dominant HBM write traffic): loose tolerance.
    out_bf16 = conv_bn_relu(x, weight, bias, gamma, beta, running_mean, running_var,
                            out_dtype=jnp.bfloat16)
    jax.block_until_ready(out_bf16)
    assert out_bf16.dtype == jnp.bfloat16
    assert jnp.allclose(out_bf16.astype(jnp.float32), ref, atol=5e-2, rtol=5e-2)

    # Ragged / multi-step grid path: P=400 pixels with a forced 128-pixel tile
    # (cdiv grid, masked last block) to exercise the non-divisor tiling.
    H2 = W2 = 20
    x2 = jax.random.normal(kx2, (N, Cin, H2, W2), dtype=jnp.float32)
    ref2 = reference(x2)
    out2 = conv_bn_relu(x2, weight, bias, gamma, beta, running_mean, running_var,
                        pixel_tile=128)
    jax.block_until_ready(out2)
    assert out2.shape == (N, Cout, H2, W2)
    assert jnp.allclose(out2, ref2, atol=1e-5, rtol=1e-5)

    # TODO(synk): BatchNorm training-mode (batch statistics + running-stat update)
    # is not implemented; this kernel implements eval/inference semantics.
    print("KERNEL_OK")
</pallas_src>

<mosaic_0001>
module attributes {stable_mosaic.version = 11 : i64} {
  func.func @_conv_bn_relu_kernel(%arg0: i32, %arg1: i32, %arg2: memref<1x4x256xf32, #tpu.memory_space<vmem>>, %arg3: memref<8x4xf32, #tpu.memory_space<vmem>>, %arg4: memref<8x1xf32, #tpu.memory_space<vmem>>, %arg5: memref<1x8x256xf32, #tpu.memory_space<vmem>>) attributes {dimension_semantics = [#tpu.dimension_semantics<parallel>, #tpu.dimension_semantics<parallel>], iteration_bounds = array<i64: 2, 1>, scalar_prefetch = 0 : i64, scratch_operands = 0 : i64, tpu.core_type = #tpu.core_type<tc>, window_params = [{transform_indices = @transform_0, window_bounds = array<i64: 1, 4, 256>}, {pipeline_mode = #tpu.pipeline_mode<synchronous>, transform_indices = @transform_1, window_bounds = array<i64: 8, 4>}, {pipeline_mode = #tpu.pipeline_mode<synchronous>, transform_indices = @transform_2, window_bounds = array<i64: 8, 1>}, {transform_indices = @transform_3, window_bounds = array<i64: 1, 8, 256>}]} {
    %c0 = arith.constant 0 : index
    %c0_0 = arith.constant 0 : index
    %0 = vector.load %arg3[%c0, %c0_0] : memref<8x4xf32, #tpu.memory_space<vmem>>, vector<8x4xf32>
    %c0_1 = arith.constant 0 : index
    %c0_2 = arith.constant 0 : index
    %c0_3 = arith.constant 0 : index
    %1 = vector.load %arg2[%c0_1, %c0_2, %c0_3] : memref<1x4x256xf32, #tpu.memory_space<vmem>>, vector<1x4x256xf32>
    %2 = vector.shape_cast %1 : vector<1x4x256xf32> to vector<4x256xf32>
    %cst = arith.constant dense<0.000000e+00> : vector<8x256xf32>
    %3 = tpu.matmul %0, %2, %cst {dimension_numbers = #tpu.dot_dimension_numbers<[1], [0], [0], [1], [0, 0, 1, 1], [], []>} : vector<8x4xf32>, vector<4x256xf32>, vector<8x256xf32> -> vector<8x256xf32>
    %c0_4 = arith.constant 0 : index
    %c0_5 = arith.constant 0 : index
    %4 = vector.load %arg4[%c0_4, %c0_5] : memref<8x1xf32, #tpu.memory_space<vmem>>, vector<8x1xf32>
    %5 = vector.broadcast %4 : vector<8x1xf32> to vector<8x256xf32>
    %6 = arith.addf %3, %5 : vector<8x256xf32>
    %cst_6 = arith.constant 0.000000e+00 : f32
    %7 = vector.broadcast %cst_6 : f32 to vector<8x256xf32>
    %8 = arith.maximumf %6, %7 : vector<8x256xf32>
    %c0_7 = arith.constant 0 : index
    %c0_8 = arith.constant 0 : index
    %c0_9 = arith.constant 0 : index
    %9 = vector.load %arg5[%c0_7, %c0_8, %c0_9] : memref<1x8x256xf32, #tpu.memory_space<vmem>>, vector<1x8x256xf32>
    %10 = vector.shape_cast %9 : vector<1x8x256xf32> to vector<8x256xf32>
    %11 = vector.shape_cast %8 : vector<8x256xf32> to vector<1x8x256xf32>
    tpu.vector_store %arg5[%c0_7, %c0_8, %c0_9], %11 {strides = array<i32>} : memref<1x8x256xf32, #tpu.memory_space<vmem>>, vector<1x8x256xf32>,
    return
  }
  func.func @transform_0(%arg0: i32, %arg1: i32) -> (i32, i32, i32) {
    %c0_i32 = arith.constant 0 : i32
    %c0_i32_0 = arith.constant 0 : i32
    return %arg0, %c0_i32, %arg1 : i32, i32, i32
  }
  func.func @transform_1(%arg0: i32, %arg1: i32) -> (i32, i32) {
    %c0_i32 = arith.constant 0 : i32
    %c0_i32_0 = arith.constant 0 : i32
    %c0_i32_1 = arith.constant 0 : i32
    return %c0_i32, %c0_i32_0 : i32, i32
  }
  func.func @transform_2(%arg0: i32, %arg1: i32) -> (i32, i32) {
    %c0_i32 = arith.constant 0 : i32
    %c0_i32_0 = arith.constant 0 : i32
    %c0_i32_1 = arith.constant 0 : i32
    return %c0_i32, %c0_i32_0 : i32, i32
  }
  func.func @transform_3(%arg0: i32, %arg1: i32) -> (i32, i32, i32) {
    %c0_i32 = arith.constant 0 : i32
    %c0_i32_0 = arith.constant 0 : i32
    return %arg0, %c0_i32, %arg1 : i32, i32, i32
  }
}

</mosaic_0001>

<bundles_post_ra>
// kernel: tpu_custom_call.1
= control target key start
LH: loop header
LB: loop body
LE: loop exit
PB: predicated region body
PF: predicated region fallthrough
CT: control target
= control target key end

     0   :  { %8 = vsyncpa [#allocation3], 0  ;;  %s640_s0 = inlined_call_operand.vmem [shape: f32[2,4,256], index: 0, kind: input, shape index: {}]   ;;  %s641_s1 = inlined_call_operand.vmem [shape: f32[8,4], index: 1, kind: input, shape index: {}]   ;;  %s642_s2 = inlined_call_operand.vmem [shape: f32[8,1], index: 2, kind: input, shape index: {}]   ;;  %s643_s3 = inlined_call_operand.hbm [shape: f32[2,8,256], index: 3, kind: output, shape index: {}]  }
   0x1   :  { %10 = vsyncpa [#allocation3 + $0x1], 0  ;;  %s537_s12 = smov 0   ;;  %s539_s13 = smov 0  }
   0x2   :  { %s541_s14 = smov 0   ;;  %s543_s15 = smov 0  }
   0x3   :  { %s545_s16 = smov 0   ;;  %s547_s17 = smov 0  }
   0x4 LB: > { %s360_s18 = sadd.s32 4294967295, %s514_s17   ;;  %s361_s19 = sadd.s32 4294967294, %s514_s17   ;;  %s514_s17 = sphi %s547_s17, %s16_s17   ;;  %s510_s16 = sphi %s545_s16, %s650_s16   ;;  %s506_s15 = sphi %s543_s15, %s649_s15   ;;  %s502_s14 = sphi %s541_s14, %s648_s14   ;;  %s498_s13 = sphi %s539_s13, %s647_s13   ;;  %s494_s12 = sphi %s537_s12, %s646_s12  }
   0x5   : > { %s28_s20 = sadd.s32 1, %s510_s16  ;;  %s107_s21 = sadd.s32 1, %s502_s14 }
   0x6   : > { %p30_p0 = scmp.ge.s32.totalorder %s28_s20, 2  ;;  %p117_p1 = scmp.ne.s32.totalorder %s502_s14, %s498_s13 }
   0x7   : > { %p118_p2 = scmp.eq.s32.totalorder %s360_s18, 1  ;;  %p123_p3 = scmp.ne.s32.totalorder %s498_s13, %s494_s12 }
   0x8   : > { %s652_s20 = smov (%p30_p0, %s28_s20), 0  ;;  %p124_p5 = scmp.eq.s32.totalorder %s361_s19, 1 }
   0x9   : > { %p577_p4 = por %p118_p2, %p117_p1  ;;  %s102_s23 = ssub.s32 %s510_s16, %s652_s20 }
   0xa   : > { %p364_p6 = scmp.ge.s32.totalorder %s514_s17, 1  ;;  %p105_p7 = scmp.eq.s32.totalorder %s102_s23, 0 }
   0xb   : > { %p584_p8 = por %p124_p5, %p123_p3  ;;  %p161_p9 = scmp.lt.s32.totalorder %s514_s17, 3 }
   0xc   : > { %s590_s25 = scalar_select %p105_p7, %s502_s14, %s107_s21  }
   0xd   : > { %p162_p10 = pnand %p364_p6, %p161_p9 }
   0xe   : > { %p190_p11 = scmp.lt.s32.totalorder (!%p162_p10), %s506_s15, 1  ;;  %s186_s8 = sand.u32 (!%p162_p10), 1, %s498_s13  }
   0xf   : > { %165 = sbr.rel (%p162_p10) target bundleno = 168 (0xa8), region = 32  ;;  %s365_s9 = sshll.u32 (!%p162_p10), %s186_s8, 4 }
  0x10   : > { %s378_s10 = sshll.u32 (!%p162_p10), %s506_s15, 4  ;;  %s188_s21 = scalar_lea.vmem (!%p162_p10), [#allocation2], %s365_s9 }
  0x11   : > { %s279_s19 = scalar_lea.hbm (!%p162_p10), %s643_s3, %s378_s10  ;;  %s281_s23 = sshll.u32 (!%p162_p10), %s188_s21, 4  ;;  %s282_s23 = int_to_ptr.vmem [resolvable:$true] %s281_s23 }
  0x12   : > { %s283_s26 = sshll.u32 (!%p162_p10), %s279_s19, 4  ;;  %s456_s4 = scalar_lea.hbm (!%p162_p10), %s643_s3, 32  ;;  %s284_s26 = int_to_ptr.hbm [resolvable:$true] %s283_s26 }
  0x13   : > { %s450_s27 = sshra.s32 (!%p162_p10), %s284_s26, 4  ;;  %s451_s27 = int_to_ptr.hbm [resolvable:$true] %s450_s27 }
  0x14   : > { %v202_v0 = vld [vmem:[%s642_s2] sm:$0xff]  ;;  %v516_v1 = vmov 0   ;;  %s191_s28 = scalar_select %p190_p11, %s506_s15, 1  ;;  %vm216_vm0 = vcmask 1043456   ;;  %vm212_vm1 = vcmask 31744  }
  0x15   : > { %435 = vset.pattern.permute.xlu0 %v516_v1  ;;  %v200_v3 = vld [vmem:[%s641_s1] sm:$0xff]  ;;  %s266_s15 = scalar_lea.sflag [#allocation3], %s186_s8  ;;  %p457_p1 = scmp.lt.s32.totalorder %s451_s27, %s643_s3 }
  0x16   : > { %205 = vperm.xlu0 %435, %v202_v0   ;;  %s377_s29 = sshll.u32 %s191_s28, 3  ;;  %s452_s28 = scalar_lea.hbm %s451_s27, 16 }
  0x17   : > { %s197_s5 = scalar_lea.vmem %s640_s0, %s377_s29  ;;  %p453_p12 = scmp.ne.s32.totalorder %s451_s27, %s452_s28 }
  0x18   : > { %v201_v2 = vld [vmem:[%s197_s5] sm:$0xff]  ;;  %p458_p2 = scmp.lt.s32.totalorder %s456_s4, %s452_s28 }
  0x19   : > { %209 = vst [vmem:[#allocation1] ss:$2 sm:$0xff] %v201_v2  ;;  %p454_p13 = pnand %p453_p12, %p577_p4 }
  0x1a   : > { %p459_p3 = por %p458_p2, %p457_p1 }
  0x1b   : > { %p455_p0 = pneg %p454_p13 }
  0x1d   : > { %p460_p5 = pnand %p459_p3, %p455_p0 }
  0x20   : > { %v210_v4 = vld.sshfl [vmem:[#allocation1] sm:$0xff pattern:$0x75316420]  ;;  %v211_v5 = vld.sshfl [vmem:[#allocation1 + $0x8] sm:$0xff pattern:$0x75316420] }
  0x21   : > { %368 = vmatpush.msk.msra.mxu0 %vm216_vm0, %v210_v4  ;;  %370 = vmatpush.msk.msra.mxu1 %vm216_vm0, %v211_v5 }
  0x22   : > { %369 = vmatmul.msk.f32.vlgmr.msra.gmra.mxu0 %vm212_vm1, %v200_v3  ;;  %371 = vmatmul.msk.f32.vlgmr.msra.gmra.mxu1 %vm212_vm1, %v200_v3 }
  0x88   : > { %v206_v6 = vpop.permute.xlu0 %205 }
  0x9f   : > { %v238_v7 = vpop.f32.mrf.mxu0  ;;  %v258_v8 = vpop.f32.mrf.mxu1 }
  0xa0   : > { %v239_v9 = vadd.f32 %v238_v7, %v206_v6  ;;  %v259_v10 = vadd.f32 %v258_v8, %v206_v6 }
  0xa2   : > { %v261_v11 = vmax.f32 %v239_v9, 0.0  ;;  %v262_v12 = vmax.f32 %v259_v10, 0.0 }
  0xa4   : > { %263 = vst [vmem:[%s188_s21] sm:$0xff] %v261_v11 }
  0xa5   : > { %264 = vst [vmem:[%s188_s21 + $0x8] sm:$0xff] %v262_v12 }
  0xa6   : > { %463 = shalt.err (!%p460_p5)
}
  0xa7   : > { %379 = dma.vmem_to_hbm [thread:$0]  (%p577_p4), %s282_s23, 256, %s284_s26, %s266_s15  }
  0xa8 PF: > { %p385_p6 = scmp.ge.s32.totalorder %s514_s17, 2  ;;  %s295_s7 = sand.u32 1, %s494_s12  }
  0xa9   : > { %s296_s8 = scalar_lea.sflag [#allocation3], %s295_s7 }
  0xaa   : > { %p382_p7 = pnand %p385_p6, %p584_p8 }
  0xac   : > { %p383_p9 = pneg %p382_p7 }
  0xae   : > { %489 = dma.done.wait (%p383_p9), %s296_s8, 256  }
  0xaf   : > { %491 = vsyncadd (%p383_p9), %s296_s8, 4294967040  ;;  %s16_s17 = sadd.s32 1, %s514_s17   ;;  %s646_s12 = smov %s498_s13 }
  0xb0   : > { %p13_p10 = scmp.ge.s32.totalorder %s16_s17, 4   ;;  %s647_s13 = smov %s502_s14 }
  0xb1   : > { %s648_s14 = smov %s590_s25  ;;  %s649_s15 = smov %s510_s16 }
  0xb2   : > { %s650_s16 = smov %s652_s20  ;;  %15 = sbr.rel (!%p13_p10) target bundleno = 4 (0x4), region = 67 }
  0xb7   :  { %302 = vsyncpa [#allocation3], 1 }
  0xb8   :  { %304 = vsyncpa [#allocation3 + $0x1], 1 }

</bundles_post_ra>
